<compile_context>
chip_gen: v7x
topology: tpu7x:2x2x1
jax: 0.10.0
libtpu: 0.0.40
codegen_flags: <defaults>
</compile_context>

<pallas_src>
import functools
import math

import jax
import jax.numpy as jnp
from jax.experimental import pallas as pl
from jax.experimental.pallas import tpu as pltpu


def _round_up(v, m):
    return (v + m - 1) // m * m


def _footprint_bytes(tile_h, W, cdt_size, odt_size, cout):
    """Generous per-step VMEM estimate used only to pick tile_h."""
    M = tile_h * W
    input_blocks = 2 * 2 * 8 * M * cdt_size    # 2 input specs x 2 buffers x 8-sublane pad
    masks = 2 * 2 * 8 * M * cdt_size           # 2 mask specs x 2 buffers x sublane pad
    b_scratch = 32 * M * cdt_size              # 27 im2col rows padded to 32 sublanes
    temporaries = 24 * M * cdt_size            # slice/concat temporaries (fudge)
    out_blocks = 2 * cout * M * odt_size       # double-buffered output
    dot_result = cout * M * 4                  # f32 matmul result before cast
    return input_blocks + masks + b_scratch + temporaries + out_blocks + dot_result


def _choose_tiling(H, W, cdt_size, odt_size, cout, budget_bytes):
    """Pick (tile_h, H_pad) with (tile_h*W) % 128 == 0 and tile_h >= 3."""
    base = 128 // math.gcd(W, 128)             # smallest th with (th*W) % 128 == 0
    min_th = base * ((3 + base - 1) // base)   # smallest multiple of base that is >= 3

    # Prefer exact divisors of H (no wasted rows, no output slice pass).
    best = None
    for th in range(min_th, H + 1):
        if (H % th == 0 and th % base == 0 and
                _footprint_bytes(th, W, cdt_size, odt_size, cout) <= budget_bytes):
            best = th
    if best is not None:
        return best, H

    # Fallback: pad H up to a multiple of a good tile_h (one cheap output
    # slice on the host) instead of degrading to tiny tiles.
    th = min_th
    cap = _round_up(max(H, min_th), base)
    while (th + base <= cap and
           _footprint_bytes(th + base, W, cdt_size, odt_size, cout) <= budget_bytes):
        th += base
    return th, _round_up(max(H, th), th)


def _conv3x3_kernel(xc_ref, xn_ref, w_ref, ml_ref, mr_ref, o_ref, b_ref, *,
                    Cin, W, M):
    # xc_ref : (1, Cin, M)     flattened padded rows of this tile (shifted by +1)
    # xn_ref : (1, Cin, M)     the following block; only its first 2*W+2 lanes used
    # w_ref  : (Cout, 9*Cin)   packed weight, col k = ky*3*Cin + kx*Cin + ci
    # ml/mr  : (1, M)          column-boundary masks (0 where col==0 / col==W-1)
    # o_ref  : (1, Cout, M)    lane-dense output block
    # b_ref  : (9*Cin, M)      im2col RHS scratch (compute dtype)
    ml = ml_ref[...]
    mr = mr_ref[...]

    # Build the 27-row im2col RHS: row (ky*3+kx)*Cin + ci holds the input
    # shifted by (ky, kx-1) in the flattened (row-major) spatial layout.
    for ky in range(3):
        for kx in range(3):
            off = ky * W + kx               # 0 <= off <= 2*W + 2 < M
            if off == 0:
                blk = xc_ref[0]
            else:
                blk = jnp.concatenate(
                    [xc_ref[0, :, off:], xn_ref[0, :, :off]], axis=1)
            if kx == 0:
                blk = blk * ml              # left neighbor invalid at col 0
            elif kx == 2:
                blk = blk * mr              # right neighbor invalid at col W-1
            r = (ky * 3 + kx) * Cin
            b_ref[r:r + Cin, :] = blk

    # Single MXU matmul; the contraction (K = 9*Cin = 27) accumulates all taps.
    o_ref[0] = jnp.dot(w_ref[...], b_ref[...],
                       preferred_element_type=jnp.float32).astype(o_ref.dtype)


def overlap_patch_embed(x_nchw, weight_oihw, *, tile_h=None,
                        compute_dtype=jnp.bfloat16,
                        vmem_budget_bytes=20 * 1024 * 1024,
                        vmem_limit_bytes=None):
    """OverlapPatchEmbed forward: 3x3 / stride 1 / pad 1 / no-bias conv.

    x_nchw:      (N, in_c, H, W)
    weight_oihw: (embed_dim, in_c, 3, 3)
    returns:     (N, embed_dim, H, W), dtype of x

    Note: compute_dtype=bfloat16 rounds the MXU operands (f32 accumulation);
    pass compute_dtype=jnp.float32 for bit-closer parity with PyTorch Conv2d.
    """
    N, Cin, H, W = x_nchw.shape
    Cout, Cin_w, kh, kw = weight_oihw.shape
    assert (Cin_w, kh, kw) == (Cin, 3, 3), "expected a (Cout, Cin, 3, 3) conv weight"
    assert W >= 2, "W must be >= 2"

    cdt = jnp.dtype(compute_dtype)
    odt = jnp.dtype(x_nchw.dtype)

    if tile_h is None:
        tile_h, H_pad = _choose_tiling(H, W, cdt.itemsize, odt.itemsize, Cout,
                                       vmem_budget_bytes)
    else:
        assert tile_h >= 3 and (tile_h * W) % 128 == 0, \
            "tile_h must be >= 3 and tile_h*W a multiple of 128"
        H_pad = _round_up(H, tile_h)

    n_tiles = H_pad // tile_h
    M = tile_h * W

    foot = _footprint_bytes(tile_h, W, cdt.itemsize, odt.itemsize, Cout)
    if vmem_limit_bytes is None:
        vmem_limit_bytes = max(32 * 1024 * 1024, int(foot * 1.2))

    # ---- host prep: no transposes, only a small pad pass over the Cin-wide
    # input plus free (contiguous) reshapes. ----
    x_c = x_nchw.astype(cdt)
    # zero rows: 1 on top, 1 + (H_pad - H) at the bottom
    x_rows = jnp.pad(x_c, ((0, 0), (0, 0), (1, 1 + H_pad - H), (0, 0)))
    x_flat = x_rows.reshape(N, Cin, (H_pad + 2) * W)
    # Shift right by one element (so every tap offset ky*W + kx is >= 0) and
    # pad the tail so the "next block" view (t + 1) is always in range.
    L = (n_tiles + 1) * M
    tail = L - 1 - (H_pad + 2) * W          # = (tile_h - 2)*W - 1 >= 0
    x_flat = jnp.pad(x_flat, ((0, 0), (0, 0), (1, tail)))

    # Packed weight: (Cout, 9*Cin), column k = ky*3*Cin + kx*Cin + ci.
    w_packed = jnp.transpose(weight_oihw, (0, 2, 3, 1)).reshape(Cout, 9 * Cin)
    w_packed = w_packed.astype(cdt)

    # Column-boundary masks over a flattened (tile_h, W) tile.
    col = jnp.arange(M, dtype=jnp.int32) % W
    mask_l = (col != 0).astype(cdt).reshape(1, M)
    mask_r = (col != W - 1).astype(cdt).reshape(1, M)

    kernel = functools.partial(_conv3x3_kernel, Cin=Cin, W=W, M=M)

    y_flat = pl.pallas_call(
        kernel,
        out_shape=jax.ShapeDtypeStruct((N, Cout, H_pad * W), odt),
        grid_spec=pltpu.PrefetchScalarGridSpec(
            num_scalar_prefetch=0,
            grid=(N, n_tiles),
            in_specs=[
                # Center block: flattened rows of this H tile.
                pl.BlockSpec((1, Cin, M), lambda n, t: (n, 0, t)),
                # Next block: supplies the 2-row bottom halo (first 2W+2 lanes).
                pl.BlockSpec((1, Cin, M), lambda n, t: (n, 0, t + 1)),
                # Packed weights / masks: same block every step -> VMEM-resident.
                pl.BlockSpec((Cout, 9 * Cin), lambda n, t: (0, 0)),
                pl.BlockSpec((1, M), lambda n, t: (0, 0)),
                pl.BlockSpec((1, M), lambda n, t: (0, 0)),
            ],
            out_specs=pl.BlockSpec((1, Cout, M), lambda n, t: (n, 0, t)),
            scratch_shapes=[pltpu.VMEM((9 * Cin, M), cdt)],
        ),
        compiler_params=pltpu.CompilerParams(
            dimension_semantics=("parallel", "parallel"),
            vmem_limit_bytes=vmem_limit_bytes,
        ),
    )(x_flat, x_flat, w_packed, mask_l, mask_r)

    # Free reshape back to NCHW; slice only when H had to be padded.
    y = y_flat.reshape(N, Cout, H_pad, W)
    if H_pad != H:
        y = y[:, :, :H, :]
    return y


def _reference_conv3x3(x_nchw, weight_oihw):
    """Pure-JAX reference (lax conv) for correctness checking."""
    return jax.lax.conv_general_dilated(
        x_nchw, weight_oihw, window_strides=(1, 1),
        padding=((1, 1), (1, 1)),
        dimension_numbers=("NCHW", "OIHW", "NCHW"))


if __name__ == "__main__":
    in_c, embed_dim = 3, 48
    N, H, W = 2, 16, 16

    key = jax.random.PRNGKey(0)
    k_x, k_w = jax.random.split(key)
    x = jax.random.normal(k_x, (N, in_c, H, W), dtype=jnp.float32)
    weight = jax.random.normal(k_w, (embed_dim, in_c, 3, 3), dtype=jnp.float32) * 0.1

    ref = _reference_conv3x3(x, weight)

    # f32 path with an explicit small tile so the multi-tile halo path is
    # exercised (grid = (2, 2)).
    f32_fn = jax.jit(functools.partial(
        overlap_patch_embed, tile_h=8, compute_dtype=jnp.float32))
    out_f32 = jax.block_until_ready(f32_fn(x, weight))
    assert out_f32.shape == (N, embed_dim, H, W), out_f32.shape
    assert jnp.allclose(out_f32, ref, atol=1e-4, rtol=1e-4), "f32 kernel mismatch"

    # Default path: bf16 MXU operands, f32 accumulation, auto-sized H tile.
    bf16_fn = jax.jit(overlap_patch_embed)
    out_bf16 = jax.block_until_ready(bf16_fn(x, weight))
    assert out_bf16.shape == (N, embed_dim, H, W), out_bf16.shape
    assert jnp.allclose(out_bf16, ref, atol=5e-2, rtol=5e-2), "bf16 kernel mismatch"

    print("KERNEL_OK")
</pallas_src>

<mosaic_0001>
module attributes {stable_mosaic.version = 11 : i64} {
  func.func @_conv3x3_kernel(%arg0: i32, %arg1: i32, %arg2: memref<1x3x128xf32, #tpu.memory_space<vmem>>, %arg3: memref<1x3x128xf32, #tpu.memory_space<vmem>>, %arg4: memref<48x27xf32, #tpu.memory_space<vmem>>, %arg5: memref<1x128xf32, #tpu.memory_space<vmem>>, %arg6: memref<1x128xf32, #tpu.memory_space<vmem>>, %arg7: memref<1x48x128xf32, #tpu.memory_space<vmem>>, %arg8: memref<27x128xf32, #tpu.memory_space<vmem>>) attributes {dimension_semantics = [#tpu.dimension_semantics<parallel>, #tpu.dimension_semantics<parallel>], iteration_bounds = array<i64: 2, 2>, scalar_prefetch = 0 : i64, scratch_operands = 1 : i64, tpu.core_type = #tpu.core_type<tc>, window_params = [{transform_indices = @transform_0, window_bounds = array<i64: 1, 3, 128>}, {transform_indices = @transform_1, window_bounds = array<i64: 1, 3, 128>}, {pipeline_mode = #tpu.pipeline_mode<synchronous>, transform_indices = @transform_2, window_bounds = array<i64: 48, 27>}, {pipeline_mode = #tpu.pipeline_mode<synchronous>, transform_indices = @transform_3, window_bounds = array<i64: 1, 128>}, {pipeline_mode = #tpu.pipeline_mode<synchronous>, transform_indices = @transform_4, window_bounds = array<i64: 1, 128>}, {transform_indices = @transform_5, window_bounds = array<i64: 1, 48, 128>}]} {
    %c0 = arith.constant 0 : index
    %c0_0 = arith.constant 0 : index
    %0 = vector.load %arg5[%c0, %c0_0] : memref<1x128xf32, #tpu.memory_space<vmem>>, vector<1x128xf32>
    %c0_1 = arith.constant 0 : index
    %c0_2 = arith.constant 0 : index
    %1 = vector.load %arg6[%c0_1, %c0_2] : memref<1x128xf32, #tpu.memory_space<vmem>>, vector<1x128xf32>
    %c0_3 = arith.constant 0 : index
    %c0_4 = arith.constant 0 : index
    %c0_5 = arith.constant 0 : index
    %2 = vector.load %arg2[%c0_3, %c0_4, %c0_5] : memref<1x3x128xf32, #tpu.memory_space<vmem>>, vector<1x3x128xf32>
    %3 = vector.shape_cast %2 : vector<1x3x128xf32> to vector<3x128xf32>
    %4 = vector.broadcast %0 : vector<1x128xf32> to vector<3x128xf32>
    %5 = arith.mulf %3, %4 : vector<3x128xf32>
    %c0_6 = arith.constant 0 : index
    %c0_7 = arith.constant 0 : index
    %6 = vector.load %arg8[%c0_6, %c0_7] : memref<27x128xf32, #tpu.memory_space<vmem>>, vector<3x128xf32>
    tpu.vector_store %arg8[%c0_6, %c0_7], %5 {strides = array<i32>} : memref<27x128xf32, #tpu.memory_space<vmem>>, vector<3x128xf32>,
    %c0_8 = arith.constant 0 : index
    %c0_9 = arith.constant 0 : index
    %c1 = arith.constant 1 : index
    %7 = vector.load %arg2[%c0_8, %c0_9, %c1] : memref<1x3x128xf32, #tpu.memory_space<vmem>>, vector<1x3x127xf32>
    %8 = vector.shape_cast %7 : vector<1x3x127xf32> to vector<3x127xf32>
    %c0_10 = arith.constant 0 : index
    %c0_11 = arith.constant 0 : index
    %c0_12 = arith.constant 0 : index
    %9 = vector.load %arg3[%c0_10, %c0_11, %c0_12] : memref<1x3x128xf32, #tpu.memory_space<vmem>>, vector<1x3x1xf32>
    %10 = vector.shape_cast %9 : vector<1x3x1xf32> to vector<3x1xf32>
    %11 = tpu.concatenate %8, %10 in 1 : vector<3x127xf32>, vector<3x1xf32> -> vector<3x128xf32>
    %c3 = arith.constant 3 : index
    %c0_13 = arith.constant 0 : index
    %12 = vector.load %arg8[%c3, %c0_13] : memref<27x128xf32, #tpu.memory_space<vmem>>, vector<3x128xf32>
    tpu.vector_store %arg8[%c3, %c0_13], %11 {strides = array<i32>} : memref<27x128xf32, #tpu.memory_space<vmem>>, vector<3x128xf32>,
    %c0_14 = arith.constant 0 : index
    %c0_15 = arith.constant 0 : index
    %c2 = arith.constant 2 : index
    %13 = vector.load %arg2[%c0_14, %c0_15, %c2] : memref<1x3x128xf32, #tpu.memory_space<vmem>>, vector<1x3x126xf32>
    %14 = vector.shape_cast %13 : vector<1x3x126xf32> to vector<3x126xf32>
    %c0_16 = arith.constant 0 : index
    %c0_17 = arith.constant 0 : index
    %c0_18 = arith.constant 0 : index
    %15 = vector.load %arg3[%c0_16, %c0_17, %c0_18] : memref<1x3x128xf32, #tpu.memory_space<vmem>>, vector<1x3x2xf32>
    %16 = vector.shape_cast %15 : vector<1x3x2xf32> to vector<3x2xf32>
    %17 = tpu.concatenate %14, %16 in 1 : vector<3x126xf32>, vector<3x2xf32> -> vector<3x128xf32>
    %18 = vector.broadcast %1 : vector<1x128xf32> to vector<3x128xf32>
    %19 = arith.mulf %17, %18 : vector<3x128xf32>
    %c6 = arith.constant 6 : index
    %c0_19 = arith.constant 0 : index
    %20 = vector.load %arg8[%c6, %c0_19] : memref<27x128xf32, #tpu.memory_space<vmem>>, vector<3x128xf32>
    tpu.vector_store %arg8[%c6, %c0_19], %19 {strides = array<i32>} : memref<27x128xf32, #tpu.memory_space<vmem>>, vector<3x128xf32>,
    %c0_20 = arith.constant 0 : index
    %c0_21 = arith.constant 0 : index
    %c16 = arith.constant 16 : index
    %21 = vector.load %arg2[%c0_20, %c0_21, %c16] : memref<1x3x128xf32, #tpu.memory_space<vmem>>, vector<1x3x112xf32>
    %22 = vector.shape_cast %21 : vector<1x3x112xf32> to vector<3x112xf32>
    %c0_22 = arith.constant 0 : index
    %c0_23 = arith.constant 0 : index
    %c0_24 = arith.constant 0 : index
    %23 = vector.load %arg3[%c0_22, %c0_23, %c0_24] : memref<1x3x128xf32, #tpu.memory_space<vmem>>, vector<1x3x16xf32>
    %24 = vector.shape_cast %23 : vector<1x3x16xf32> to vector<3x16xf32>
    %25 = tpu.concatenate %22, %24 in 1 : vector<3x112xf32>, vector<3x16xf32> -> vector<3x128xf32>
    %26 = vector.broadcast %0 : vector<1x128xf32> to vector<3x128xf32>
    %27 = arith.mulf %25, %26 : vector<3x128xf32>
    %c9 = arith.constant 9 : index
    %c0_25 = arith.constant 0 : index
    %28 = vector.load %arg8[%c9, %c0_25] : memref<27x128xf32, #tpu.memory_space<vmem>>, vector<3x128xf32>
    tpu.vector_store %arg8[%c9, %c0_25], %27 {strides = array<i32>} : memref<27x128xf32, #tpu.memory_space<vmem>>, vector<3x128xf32>,
    %c0_26 = arith.constant 0 : index
    %c0_27 = arith.constant 0 : index
    %c17 = arith.constant 17 : index
    %29 = vector.load %arg2[%c0_26, %c0_27, %c17] : memref<1x3x128xf32, #tpu.memory_space<vmem>>, vector<1x3x111xf32>
    %30 = vector.shape_cast %29 : vector<1x3x111xf32> to vector<3x111xf32>
    %c0_28 = arith.constant 0 : index
    %c0_29 = arith.constant 0 : index
    %c0_30 = arith.constant 0 : index
    %31 = vector.load %arg3[%c0_28, %c0_29, %c0_30] : memref<1x3x128xf32, #tpu.memory_space<vmem>>, vector<1x3x17xf32>
    %32 = vector.shape_cast %31 : vector<1x3x17xf32> to vector<3x17xf32>
    %33 = tpu.concatenate %30, %32 in 1 : vector<3x111xf32>, vector<3x17xf32> -> vector<3x128xf32>
    %c12 = arith.constant 12 : index
    %c0_31 = arith.constant 0 : index
    %34 = vector.load %arg8[%c12, %c0_31] : memref<27x128xf32, #tpu.memory_space<vmem>>, vector<3x128xf32>
    tpu.vector_store %arg8[%c12, %c0_31], %33 {strides = array<i32>} : memref<27x128xf32, #tpu.memory_space<vmem>>, vector<3x128xf32>,
    %c0_32 = arith.constant 0 : index
    %c0_33 = arith.constant 0 : index
    %c18 = arith.constant 18 : index
    %35 = vector.load %arg2[%c0_32, %c0_33, %c18] : memref<1x3x128xf32, #tpu.memory_space<vmem>>, vector<1x3x110xf32>
    %36 = vector.shape_cast %35 : vector<1x3x110xf32> to vector<3x110xf32>
    %c0_34 = arith.constant 0 : index
    %c0_35 = arith.constant 0 : index
    %c0_36 = arith.constant 0 : index
    %37 = vector.load %arg3[%c0_34, %c0_35, %c0_36] : memref<1x3x128xf32, #tpu.memory_space<vmem>>, vector<1x3x18xf32>
    %38 = vector.shape_cast %37 : vector<1x3x18xf32> to vector<3x18xf32>
    %39 = tpu.concatenate %36, %38 in 1 : vector<3x110xf32>, vector<3x18xf32> -> vector<3x128xf32>
    %40 = vector.broadcast %1 : vector<1x128xf32> to vector<3x128xf32>
    %41 = arith.mulf %39, %40 : vector<3x128xf32>
    %c15 = arith.constant 15 : index
    %c0_37 = arith.constant 0 : index
    %42 = vector.load %arg8[%c15, %c0_37] : memref<27x128xf32, #tpu.memory_space<vmem>>, vector<3x128xf32>
    tpu.vector_store %arg8[%c15, %c0_37], %41 {strides = array<i32>} : memref<27x128xf32, #tpu.memory_space<vmem>>, vector<3x128xf32>,
    %c0_38 = arith.constant 0 : index
    %c0_39 = arith.constant 0 : index
    %c32 = arith.constant 32 : index
    %43 = vector.load %arg2[%c0_38, %c0_39, %c32] : memref<1x3x128xf32, #tpu.memory_space<vmem>>, vector<1x3x96xf32>
    %44 = vector.shape_cast %43 : vector<1x3x96xf32> to vector<3x96xf32>
    %c0_40 = arith.constant 0 : index
    %c0_41 = arith.constant 0 : index
    %c0_42 = arith.constant 0 : index
    %45 = vector.load %arg3[%c0_40, %c0_41, %c0_42] : memref<1x3x128xf32, #tpu.memory_space<vmem>>, vector<1x3x32xf32>
    %46 = vector.shape_cast %45 : vector<1x3x32xf32> to vector<3x32xf32>
    %47 = tpu.concatenate %44, %46 in 1 : vector<3x96xf32>, vector<3x32xf32> -> vector<3x128xf32>
    %48 = vector.broadcast %0 : vector<1x128xf32> to vector<3x128xf32>
    %49 = arith.mulf %47, %48 : vector<3x128xf32>
    %c18_43 = arith.constant 18 : index
    %c0_44 = arith.constant 0 : index
    %50 = vector.load %arg8[%c18_43, %c0_44] : memref<27x128xf32, #tpu.memory_space<vmem>>, vector<3x128xf32>
    tpu.vector_store %arg8[%c18_43, %c0_44], %49 {strides = array<i32>} : memref<27x128xf32, #tpu.memory_space<vmem>>, vector<3x128xf32>,
    %c0_45 = arith.constant 0 : index
    %c0_46 = arith.constant 0 : index
    %c33 = arith.constant 33 : index
    %51 = vector.load %arg2[%c0_45, %c0_46, %c33] : memref<1x3x128xf32, #tpu.memory_space<vmem>>, vector<1x3x95xf32>
    %52 = vector.shape_cast %51 : vector<1x3x95xf32> to vector<3x95xf32>
    %c0_47 = arith.constant 0 : index
    %c0_48 = arith.constant 0 : index
    %c0_49 = arith.constant 0 : index
    %53 = vector.load %arg3[%c0_47, %c0_48, %c0_49] : memref<1x3x128xf32, #tpu.memory_space<vmem>>, vector<1x3x33xf32>
    %54 = vector.shape_cast %53 : vector<1x3x33xf32> to vector<3x33xf32>
    %55 = tpu.concatenate %52, %54 in 1 : vector<3x95xf32>, vector<3x33xf32> -> vector<3x128xf32>
    %c21 = arith.constant 21 : index
    %c0_50 = arith.constant 0 : index
    %56 = vector.load %arg8[%c21, %c0_50] : memref<27x128xf32, #tpu.memory_space<vmem>>, vector<3x128xf32>
    tpu.vector_store %arg8[%c21, %c0_50], %55 {strides = array<i32>} : memref<27x128xf32, #tpu.memory_space<vmem>>, vector<3x128xf32>,
    %c0_51 = arith.constant 0 : index
    %c0_52 = arith.constant 0 : index
    %c34 = arith.constant 34 : index
    %57 = vector.load %arg2[%c0_51, %c0_52, %c34] : memref<1x3x128xf32, #tpu.memory_space<vmem>>, vector<1x3x94xf32>
    %58 = vector.shape_cast %57 : vector<1x3x94xf32> to vector<3x94xf32>
    %c0_53 = arith.constant 0 : index
    %c0_54 = arith.constant 0 : index
    %c0_55 = arith.constant 0 : index
    %59 = vector.load %arg3[%c0_53, %c0_54, %c0_55] : memref<1x3x128xf32, #tpu.memory_space<vmem>>, vector<1x3x34xf32>
    %60 = vector.shape_cast %59 : vector<1x3x34xf32> to vector<3x34xf32>
    %61 = tpu.concatenate %58, %60 in 1 : vector<3x94xf32>, vector<3x34xf32> -> vector<3x128xf32>
    %62 = vector.broadcast %1 : vector<1x128xf32> to vector<3x128xf32>
    %63 = arith.mulf %61, %62 : vector<3x128xf32>
    %c24 = arith.constant 24 : index
    %c0_56 = arith.constant 0 : index
    %64 = vector.load %arg8[%c24, %c0_56] : memref<27x128xf32, #tpu.memory_space<vmem>>, vector<3x128xf32>
    tpu.vector_store %arg8[%c24, %c0_56], %63 {strides = array<i32>} : memref<27x128xf32, #tpu.memory_space<vmem>>, vector<3x128xf32>,
    %c0_57 = arith.constant 0 : index
    %c0_58 = arith.constant 0 : index
    %65 = vector.load %arg4[%c0_57, %c0_58] : memref<48x27xf32, #tpu.memory_space<vmem>>, vector<48x27xf32>
    %c0_59 = arith.constant 0 : index
    %c0_60 = arith.constant 0 : index
    %66 = vector.load %arg8[%c0_59, %c0_60] : memref<27x128xf32, #tpu.memory_space<vmem>>, vector<27x128xf32>
    %cst = arith.constant dense<0.000000e+00> : vector<48x128xf32>
    %67 = tpu.matmul %65, %66, %cst {dimension_numbers = #tpu.dot_dimension_numbers<[1], [0], [0], [1], [0, 0, 1, 1], [], []>} : vector<48x27xf32>, vector<27x128xf32>, vector<48x128xf32> -> vector<48x128xf32>
    %c0_61 = arith.constant 0 : index
    %c0_62 = arith.constant 0 : index
    %c0_63 = arith.constant 0 : index
    %68 = vector.load %arg7[%c0_61, %c0_62, %c0_63] : memref<1x48x128xf32, #tpu.memory_space<vmem>>, vector<1x48x128xf32>
    %69 = vector.shape_cast %68 : vector<1x48x128xf32> to vector<48x128xf32>
    %70 = vector.shape_cast %67 : vector<48x128xf32> to vector<1x48x128xf32>
    tpu.vector_store %arg7[%c0_61, %c0_62, %c0_63], %70 {strides = array<i32>} : memref<1x48x128xf32, #tpu.memory_space<vmem>>, vector<1x48x128xf32>,
    return
  }
  func.func @transform_0(%arg0: i32, %arg1: i32) -> (i32, i32, i32) {
    %c0_i32 = arith.constant 0 : i32
    %c0_i32_0 = arith.constant 0 : i32
    return %arg0, %c0_i32, %arg1 : i32, i32, i32
  }
  func.func @transform_1(%arg0: i32, %arg1: i32) -> (i32, i32, i32) {
    %c1_i32 = arith.constant 1 : i32
    %0 = arith.addi %arg1, %c1_i32 : i32
    %c0_i32 = arith.constant 0 : i32
    %c0_i32_0 = arith.constant 0 : i32
    return %arg0, %c0_i32, %0 : i32, i32, i32
  }
  func.func @transform_2(%arg0: i32, %arg1: i32) -> (i32, i32) {
    %c0_i32 = arith.constant 0 : i32
    %c0_i32_0 = arith.constant 0 : i32
    %c0_i32_1 = arith.constant 0 : i32
    return %c0_i32, %c0_i32_0 : i32, i32
  }
  func.func @transform_3(%arg0: i32, %arg1: i32) -> (i32, i32) {
    %c0_i32 = arith.constant 0 : i32
    %c0_i32_0 = arith.constant 0 : i32
    %c0_i32_1 = arith.constant 0 : i32
    return %c0_i32, %c0_i32_0 : i32, i32
  }
  func.func @transform_4(%arg0: i32, %arg1: i32) -> (i32, i32) {
    %c0_i32 = arith.constant 0 : i32
    %c0_i32_0 = arith.constant 0 : i32
    %c0_i32_1 = arith.constant 0 : i32
    return %c0_i32, %c0_i32_0 : i32, i32
  }
  func.func @transform_5(%arg0: i32, %arg1: i32) -> (i32, i32, i32) {
    %c0_i32 = arith.constant 0 : i32
    %c0_i32_0 = arith.constant 0 : i32
    return %arg0, %c0_i32, %arg1 : i32, i32, i32
  }
}

</mosaic_0001>

<bundles_post_ra>
// kernel: overlap_patch_embed.1
= control target key start
LH: loop header
LB: loop body
LE: loop exit
PB: predicated region body
PF: predicated region fallthrough
CT: control target
= control target key end

     0   :  { %s916_s18 = smov 0   ;;  %s918_s19 = smov 0   ;;  %s1071_s0 = inlined_call_operand.vmem [shape: f32[2,3,384], index: 0, kind: input, shape index: {}, may-alias: {0,1}]   ;;  %s1072_s1 = inlined_call_operand.vmem [shape: f32[2,3,384], index: 1, kind: input, shape index: {}, may-alias: {0,1}]   ;;  %s1073_s2 = inlined_call_operand.vmem [shape: f32[48,27], index: 2, kind: input, shape index: {}]   ;;  %s1074_s3 = inlined_call_operand.vmem [shape: f32[1,128], index: 3, kind: input, shape index: {}]   ;;  %s1075_s4 = inlined_call_operand.vmem [shape: f32[1,128], index: 4, kind: input, shape index: {}]   ;;  %s1076_s5 = inlined_call_operand.vmem [shape: f32[2,48,256], index: 5, kind: output, shape index: {}]  }
   0x1   :  { %s920_s20 = smov 0   ;;  %s922_s21 = smov 0  }
   0x2   :  { %s924_s22 = smov 0   ;;  %s926_s23 = smov 0  }
   0x3   :  { %s928_s24 = smov 0  }
   0x4 LB: > { %s24_s25 = sadd.s32 1, %s867_s22  ;;  %s27_s26 = sadd.s32 1, %s871_s23  ;;  %s875_s24 = sphi %s928_s24, %s15_s24   ;;  %s871_s23 = sphi %s926_s23, %s1083_s23   ;;  %s867_s22 = sphi %s924_s22, %s1082_s22   ;;  %s863_s21 = sphi %s922_s21, %s1081_s21   ;;  %s859_s20 = sphi %s920_s20, %s1080_s20   ;;  %s855_s19 = sphi %s918_s19, %s1079_s19   ;;  %s851_s18 = sphi %s916_s18, %s1078_s18  }
   0x5   : > { %p25_p0 = scmp.ge.s32.totalorder %s24_s25, 2  ;;  %s693_s27 = sadd.s32 4294967295, %s875_s24  }
   0x6   : > { %p167_p1 = scmp.ne.s32.totalorder %s855_s19, %s851_s18  ;;  %p168_p2 = scmp.eq.s32.totalorder %s693_s27, 3 }
   0x7   : > { %s1085_s25 = smov (%p25_p0, %s24_s25), 0  ;;  %s1087_s26 = smov (!%p25_p0, %s27_s26), %s871_s23 }
   0x8   : > { %s153_s28 = ssub.s32 %s867_s22, %s1085_s25  ;;  %p29_p3 = scmp.ge.s32.totalorder %s1087_s26, 2 }
   0x9   : > { %p697_p4 = scmp.ge.s32.totalorder %s875_s24, 1  ;;  %p962_p5 = por %p168_p2, %p167_p1 }
   0xa   : > { %p225_p6 = scmp.lt.s32.totalorder %s875_s24, 5  ;;  %s1089_s26 = smov (%p29_p3, %s1087_s26), 0 }
   0xb   : > { %s152_s30 = ssub.s32 %s871_s23, %s1089_s26  ;;  %s157_s7 = sadd.s32 1, %s855_s19 }
   0xc   : > { %p226_p7 = pnand %p697_p4, %p225_p6  ;;  %s154_s6 = sor.u32 %s153_s28, %s152_s30 }
   0xd   : > { %p155_p8 = scmp.eq.s32.totalorder %s154_s6, 0  ;;  %p264_p9 = scmp.lt.s32.totalorder (!%p226_p7), %s863_s21, 1  ;;  %v990_v2 = vld [vmem:[%s1074_s3] ss:$0 sm:$0xff] (!%p226_p7)  ;;  %v410_v19 = vld [vmem:[%s1073_s2 + $0x10] sm:$0xff] (!%p226_p7)  ;;  %vm418_vm0 = vcmask (!%p226_p7), 220160  }
   0xe   : > { %229 = sbr.rel (%p226_p7) target bundleno = 414 (0x19e), region = 40  ;;  %p266_p10 = scmp.lt.s32.totalorder (!%p226_p7), %s859_s20, 2  ;;  %733 = vmatprep.mubr.msk.f32.mxu1 (!%p226_p7), %vm418_vm0, %v410_v19  ;;  %v408_v20 = vld [vmem:[%s1073_s2] sm:$0xff] (!%p226_p7)  ;;  %vm336_vm1 = vcmask (!%p226_p7), 916480   ;;  %vm316_vm2 = vcmask (!%p226_p7), 1031168   ;;  %vm363_vm3 = vcmask (!%p226_p7), 900096  }
   0xf   : > { %s973_s8 = scalar_select %p155_p8, %s855_s19, %s157_s7  }
  0x10   : > { %s272_s12 = sadd.s32 (!%p226_p7), 1, %s859_s20  ;;  %s877_s27 = smov (!%p226_p7), 112   ;;  %730 = vmatprep.mubr.msk.f32.mxu0 (!%p226_p7), %vm418_vm0, %v408_v20  ;;  %v701_v23 = vld [vmem:[%s1075_s4] ss:$0 sm:$0xff] (!%p226_p7)  ;;  %vm303_vm4 = vcmask (!%p226_p7), 1039360   ;;  %vm350_vm5 = vcmask (!%p226_p7), 908288  }
  0x11   : > { %p275_p11 = scmp.lt.s32.totalorder (!%p226_p7), %s272_s12, 2  ;;  %s878_s28 = smov (!%p226_p7), 126   ;;  %vm377_vm6 = vcmask (!%p226_p7), 785408   ;;  %vm404_vm7 = vcmask (!%p226_p7), 769024   ;;  %vm391_vm8 = vcmask (!%p226_p7), 777216   ;;  %vm437_vm9 = vcmask (!%p226_p7), 1042432  }
  0x12   : > { %s881_s15 = smov (!%p226_p7), 111   ;;  %s882_s16 = smov (!%p226_p7), 96   ;;  %vm885_vm10 = vmmov (!%p226_p7), 1   ;;  %v411_v57 = vld [vmem:[%s1073_s2 + $0x18] sm:$0xff] (!%p226_p7)  ;;  %v409_v58 = vld [vmem:[%s1073_s2 + $0x8] sm:$0xff] (!%p226_p7)  ;;  %v412_v59 = vld [vmem:[%s1073_s2 + $0x20] sm:$0xff] (!%p226_p7) }
  0x13   : > { %vm744_vm11 = vmpackc.low (!%p226_p7), %vm437_vm9, %vm885_vm10  ;;  %v413_v60 = vld [vmem:[%s1073_s2 + $0x28] sm:$0xff] (!%p226_p7) }
  0x15   : > { %s265_s9 = scalar_select %p264_p9, %s863_s21, 1 }
  0x16   : > { %s267_s10 = scalar_select %p266_p10, %s859_s20, 2 }
  0x17   : > { %s754_s11 = smul.u32 3, %s265_s9  ;;  %s1091_s12 = smov (!%p275_p11, %s272_s12), 2 }
  0x19   : > { %s269_s13 = sadd.s32 %s754_s11, %s267_s10  ;;  %s278_s30 = sadd.s32 %s754_s11, %s1091_s12 }
  0x1a   : > { %s698_s14 = sshll.u32 %s269_s13, 2  ;;  %s699_s6 = sshll.u32 %s278_s30, 2 }
  0x1b   : > { %s983_s17 = scalar_lea.vmem %s1071_s0, %s698_s14  ;;  %s996_s14 = scalar_lea.vmem %s1072_s1, %s699_s6 }
  0x1c   : > { %v326_v0 = vld [vmem:[%s983_s17] sm:$0x7]  ;;  %s879_s11 = smov 110   ;;  %s880_s12 = smov 127  }
  0x1d   : > { %v306_v1 = vld [vmem:[%s983_s17] sm:$0x7]  ;;  %329 = vrot.lane.b32.xlu1 %v326_v0, %s877_s27  ;;  %s884_s6 = smov 95   ;;  %s261_s30 = sand.u32 1, %s851_s18  }
  0x1e   : > { %309 = vrot.lane.b32.xlu0 %v306_v1, %s878_s28  ;;  %v284_v3 = vld [vmem:[%s983_s17] sm:$0x7]  ;;  %s755_s18 = smul.u32 (%p962_p5), 12, %s863_s21 }
  0x1f   : > { %v291_v4 = vmul.f32 %v990_v2, %v284_v3  ;;  %v327_v5 = vld [vmem:[%s996_s14] sm:$0x7] }
  0x20   : > { %v307_v6 = vld [vmem:[%s996_s14] sm:$0x7]  ;;  %s550_s9 = sadd.s32 (%p962_p5), %s859_s20, %s755_s18 }
  0x21   : > { %333 = vrot.lane.b32.xlu1 %v327_v5, %s877_s27  ;;  %292 = vst [vmem:[#allocation2] sm:$0x7] %v291_v4  ;;  %v354_v7 = vld [vmem:[%s996_s14] sm:$0x7]  ;;  %s883_s27 = smov 94  }
  0x22   : > { %313 = vrot.lane.b32.xlu0 %v307_v6, %s878_s28  ;;  %v353_v8 = vld [vmem:[%s983_s17] sm:$0x7] }
  0x23   : > { %v294_v9 = vld [vmem:[%s996_s14] sm:$0x7] }
  0x24   : > { %v293_v10 = vld [vmem:[%s983_s17] sm:$0x7] }
  0x25   : > { %360 = vrot.lane.b32.xlu1 %v354_v7, %s879_s11  ;;  %v341_v11 = vld [vmem:[%s996_s14] sm:$0x7] }
  0x26   : > { %356 = vrot.lane.b32.xlu0 %v353_v8, %s879_s11  ;;  %v340_v12 = vld [vmem:[%s983_s17] sm:$0x7] }
  0x27   : > { %v368_v13 = vld [vmem:[%s996_s14] sm:$0x7] }
  0x28   : > { %v367_v14 = vld [vmem:[%s983_s17] sm:$0x7] }
  0x29   : > { %300 = vrot.lane.b32.xlu1 %v294_v9, %s880_s12  ;;  %v395_v15 = vld [vmem:[%s996_s14] sm:$0x7] }
  0x2a   : > { %296 = vrot.lane.b32.xlu0 %v293_v10, %s880_s12  ;;  %v394_v16 = vld [vmem:[%s983_s17] sm:$0x7] }
  0x2b   : > { %v382_v17 = vld [vmem:[%s996_s14] sm:$0x7] }
  0x2c   : > { %v381_v18 = vld [vmem:[%s983_s17] sm:$0x7]  ;;  %s709_s17 = sshll.u32 (%p962_p5), %s550_s9, 3 }
  0x2d   : > { %347 = vrot.lane.b32.xlu1 %v341_v11, %s881_s15  ;;  %s552_s14 = scalar_lea.vmem (%p962_p5), %s1076_s5, %s709_s17 }
  0x2e   : > { %343 = vrot.lane.b32.xlu0 %v340_v12, %s881_s15 }
  0x31   : > { %374 = vrot.lane.b32.xlu1 %v368_v13, %s882_s16 }
  0x32   : > { %370 = vrot.lane.b32.xlu0 %v367_v14, %s882_s16 }
  0x35   : > { %401 = vrot.lane.b32.xlu1 %v395_v15, %s883_s27 }
  0x36   : > { %397 = vrot.lane.b32.xlu0 %v394_v16, %s883_s27 }
  0x39   : > { %388 = vrot.lane.b32.xlu1 %v382_v17, %s884_s6 }
  0x3a   : > { %384 = vrot.lane.b32.xlu0 %v381_v18, %s884_s6  ;;  %s753_s6 = smul.u32 48, %s261_s30 }
  0x3c   : > { %s263_s7 = scalar_lea.vmem [#allocation3], %s753_s6 }
  0x8f   : > { %v330_v21 = vpop.permute.xlu1 %329 }
  0x90   : > { %v310_v22 = vpop.permute.xlu0 %309 }
  0x93   : > { %v334_v24 = vpop.permute.xlu1 %333 }
  0x94   : > { %v314_v25 = vpop.permute.xlu0 %313  ;;  %v337_v26 = vsel %vm336_vm1, %v330_v21, %v334_v24 }
  0x95   : > { %v317_v27 = vsel %vm316_vm2, %v310_v22, %v314_v25  ;;  %v338_v28 = vmul.f32 %v990_v2, %v337_v26 }
  0x96   : > { %v324_v29 = vmul.f32 %v701_v23, %v317_v27 }
  0x97   : > { %339 = vst [vmem:[#allocation2 + $0x9] sm:$0x7] %v338_v28  ;;  %v361_v30 = vpop.permute.xlu1 %360 }
  0x98   : > { %325 = vst [vmem:[#allocation2 + $0x6] sm:$0x7] %v324_v29  ;;  %v357_v31 = vpop.permute.xlu0 %356 }
  0x99   : > { %v364_v32 = vsel %vm363_vm3, %v357_v31, %v361_v30 }
  0x9a   : > { %v365_v33 = vmul.f32 %v701_v23, %v364_v32 }
  0x9b   : > { %v301_v34 = vpop.permute.xlu1 %300 }
  0x9c   : > { %366 = vst [vmem:[#allocation2 + $0xf] sm:$0x7] %v365_v33  ;;  %v297_v35 = vpop.permute.xlu0 %296 }
  0x9d   : > { %v304_v36 = vsel %vm303_vm4, %v297_v35, %v301_v34 }
  0x9e   : > { %305 = vst [vmem:[#allocation2 + $0x3] sm:$0x7] %v304_v36 }
  0x9f   : > { %v348_v37 = vpop.permute.xlu1 %347 }
  0xa0   : > { %v344_v38 = vpop.permute.xlu0 %343 }
  0xa1   : > { %v351_v39 = vsel %vm350_vm5, %v344_v38, %v348_v37 }
  0xa2   : > { %352 = vst [vmem:[#allocation2 + $0xc] sm:$0x7] %v351_v39 }
  0xa3   : > { %v375_v40 = vpop.permute.xlu1 %374 }
  0xa4   : > { %v371_v41 = vpop.permute.xlu0 %370 }
  0xa5   : > { %v378_v42 = vsel %vm377_vm6, %v371_v41, %v375_v40  ;;  %v414_v47 = vld [vmem:[#allocation2] sm:$0xff] }
  0xa6   : > { %v379_v43 = vmul.f32 %v990_v2, %v378_v42 }
  0xa7   : > { %v402_v44 = vpop.permute.xlu1 %401 }
  0xa8   : > { %380 = vst [vmem:[#allocation2 + $0x12] sm:$0x7] %v379_v43  ;;  %v398_v45 = vpop.permute.xlu0 %397 }
  0xa9   : > { %v405_v46 = vsel %vm404_vm7, %v398_v45, %v402_v44  ;;  %v415_v48 = vld [vmem:[#allocation2 + $0x8] sm:$0xff] }
  0xaa   : > { %v406_v49 = vmul.f32 %v701_v23, %v405_v46  ;;  %v739_v50 = vpack.c.bf16 %v415_v48, %v414_v47 }
  0xab   : > { %v389_v51 = vpop.permute.xlu1 %388 }
  0xac   : > { %407 = vst [vmem:[#allocation2 + $0x18] sm:$0x7] %v406_v49  ;;  %v385_v52 = vpop.permute.xlu0 %384  ;;  %740 = vmatprep.subr.bf16.mxu0 %v739_v50  ;;  %749 = vmatprep.subr.bf16.mxu1 %v739_v50 }
  0xad   : > { %v392_v53 = vsel %vm391_vm8, %v385_v52, %v389_v51  ;;  %742 = vmatpush3.bf16.msra.mxu0 %v739_v50  ;;  %751 = vmatpush3.bf16.msra.mxu1 %v739_v50 }
  0xae   : > { %393 = vst [vmem:[#allocation2 + $0x15] sm:$0x7] %v392_v53 }
  0xb3   : > { %v417_v55 = vld [vmem:[#allocation2 + $0x18] sm:$0x7] }
  0xb5   : > { %v416_v54 = vld [vmem:[#allocation2 + $0x10] sm:$0xff] }
  0xb6   : > { %v743_v56 = vpack.c.bf16 %v417_v55, %v416_v54 }
  0xb8   : > { %745 = vmatprep.subr.msk.bf16.mxu0 %vm744_vm11, %v743_v56  ;;  %750 = vmatprep.subr.msk.bf16.mxu1 %vm744_vm11, %v743_v56 }
  0xb9   : > { %748 = vmatpush3.bf16.msk.msra.mxu0 %vm744_vm11, %v743_v56  ;;  %752 = vmatpush3.bf16.msk.msra.mxu1 %vm744_vm11, %v743_v56 }
  0xbc   : > { %734 = vmatmul.mubr.msk.f32.vlgmr.msra.gmra.mrb[0].mxu1 %vm418_vm0, %v411_v57  ;;  %731 = vmatmul.mubr.msk.f32.vlgmr.msra.gmra.mrb[0].mxu0 %vm418_vm0, %v409_v58 }
  0xbd   : > { %736 = vmatprep.mubr.msk.f32.mxu1 %vm418_vm0, %v412_v59 }
  0xc0   : > { %737 = vmatmul.mubr.msk.f32.gmra.mrb[2].mxu1 %vm418_vm0, %v413_v60 }
 0x18f   : > { %v735_v61 = vpop.f32.mrb[0].mxu1  ;;  %v732_v62 = vpop.f32.mrb[0].mxu0  ;;  %548 = sbr.rel (!%p962_p5) target bundleno = 414 (0x19e), region = 44 }
 0x190   : > { %539 = vst [vmem:[%s263_s7 + $0x18] sm:$0xff] %v735_v61  ;;  %v517_v63 = vpop.f32.mrb[1].mxu1  ;;  %537 = vst [vmem:[%s263_s7 + $0x8] sm:$0xff] %v732_v62  ;;  %v507_v0 = vpop.f32.mrb[1].mxu0 }
 0x191   : > { %538 = vst [vmem:[%s263_s7 + $0x10] sm:$0xff] %v517_v63  ;;  %536 = vst [vmem:[%s263_s7] sm:$0xff] %v507_v0 }
 0x193   : > { %v738_v1 = vpop.f32.mrb[2].mxu1 }
 0x194   : > { %541 = vst [vmem:[%s263_s7 + $0x28] sm:$0xff] %v738_v1  ;;  %v527_v2 = vpop.f32.mrb[3].mxu1 }
 0x195   : > { %540 = vst [vmem:[%s263_s7 + $0x20] sm:$0xff] %v527_v2 }
 0x197   : > { %v592_v4 = vld [vmem:[%s263_s7 + $0x8] sm:$0xff]  ;;  %v596_v6 = vld [vmem:[%s263_s7 + $0x18] sm:$0xff] }
 0x198   : > { %v590_v3 = vld [vmem:[%s263_s7] sm:$0xff]  ;;  %v594_v5 = vld [vmem:[%s263_s7 + $0x10] sm:$0xff]  ;;  %593 = vst [vmem:[%s552_s14 + $0x10] sm:$0xff] %v592_v4  ;;  %597 = vst [vmem:[%s552_s14 + $0x30] sm:$0xff] %v596_v6 }
 0x199   : > { %591 = vst [vmem:[%s552_s14] sm:$0xff] %v590_v3  ;;  %595 = vst [vmem:[%s552_s14 + $0x20] sm:$0xff] %v594_v5 }
 0x19b   : > { %v600_v8 = vld [vmem:[%s263_s7 + $0x28] sm:$0xff] }
 0x19c   : > { %v598_v7 = vld [vmem:[%s263_s7 + $0x20] sm:$0xff]  ;;  %601 = vst [vmem:[%s552_s14 + $0x50] sm:$0xff] %v600_v8 }
 0x19d   : > { %599 = vst [vmem:[%s552_s14 + $0x40] sm:$0xff] %v598_v7 }
 0x19e PF: > { %s15_s24 = sadd.s32 1, %s875_s24   ;;  %s1078_s18 = smov %s855_s19 }
 0x19f   : > { %p12_p12 = scmp.ge.s32.totalorder %s15_s24, 6   ;;  %s1079_s19 = smov %s973_s8 }
 0x1a0   : > { %s1080_s20 = smov %s867_s22  ;;  %s1081_s21 = smov %s871_s23 }
 0x1a1   : > { %s1082_s22 = smov %s1085_s25  ;;  %s1083_s23 = smov %s1089_s26 }
 0x1a2   :  { %14 = sbr.rel (!%p12_p12) target bundleno = 4 (0x4), region = 111 }

</bundles_post_ra>
